<compile_context>
chip_gen: v6e
topology: v6e:2x2x1
jax: 0.10.0
libtpu: 0.0.40
codegen_flags: <defaults>
</compile_context>

<pallas_src>
import functools

import jax
import jax.numpy as jnp
from jax.experimental import pallas as pl
from jax.experimental.pallas import tpu as pltpu


# ------------------------------- Pallas kernel --------------------------------

def _swiglu_ffn_kernel(x_ref, w1_ref, w3_ref, w2_ref, o_ref, acc_ref):
    # x_ref:  (tm, dim)   activation row tile (same block for every k)
    # w1_ref: (dim, th)   gate-projection column block (int8 or bf16 storage)
    # w3_ref: (dim, th)   up-projection column block
    # w2_ref: (th, dim)   down-projection row block
    # o_ref:  (tm, dim)   output row tile (same block for every k)
    # acc_ref:(tm, dim)   float32 accumulator scratch (persists across k)
    k = pl.program_id(1)

    @pl.when(k == 0)
    def _init():
        acc_ref[...] = jnp.zeros_like(acc_ref)

    x = x_ref[...]
    cdt = x.dtype                                    # compute dtype (bf16)
    # int8 -> bf16 upcast happens here, in VMEM, hidden under the matmuls; the MXU
    # always sees bf16 operands (portable across v5e / v6e / v7x).
    w1 = w1_ref[...].astype(cdt)
    w3 = w3_ref[...].astype(cdt)
    h1 = jnp.dot(x, w1, preferred_element_type=jnp.float32)
    h3 = jnp.dot(x, w3, preferred_element_type=jnp.float32)
    gated = (h1 * jax.nn.sigmoid(h1)) * h3           # silu(h1) * h3, in f32 (v5e-safe)
    acc_ref[...] += jnp.dot(gated.astype(cdt), w2_ref[...].astype(cdt),
                            preferred_element_type=jnp.float32)

    @pl.when(k == pl.num_programs(1) - 1)
    def _finalize():
        o_ref[...] = acc_ref[...].astype(o_ref.dtype)


# ------------------------------ tiling helpers ---------------------------------

def _round_up(a, b):
    return ((a + b - 1) // b) * b


@functools.lru_cache(maxsize=1)
def _tpu_generation():
    """(device-kind string, physical VMEM bytes) — queried once per process."""
    kind = ""
    try:
        kind = jax.devices()[0].device_kind.lower()
    except Exception:
        pass
    vmem_phys = None
    try:
        vmem_phys = int(pltpu.get_tpu_info().vmem_capacity_bytes)
    except Exception:
        vmem_phys = None
    if vmem_phys is None:
        vmem_phys = 64 * 2**20 if ("v7" in kind or "7x" in kind) else 128 * 2**20
    return kind, vmem_phys


def _select_config(kind, vmem_phys):
    """Generation-aware (tile_m, tile_h target, vmem-limit cap, two-TC flag)."""
    if "v7" in kind or "7x" in kind:
        # 64 MiB VMEM, 2 TCs: smaller budget, keep headroom, feed both cores.
        return 256, 512, min(48 * 2**20, int(vmem_phys * 0.75)), True
    if "v6" in kind:
        # 128 MiB VMEM, ~650 FLOP/byte roofline: biggest row tiles, th up to 1024.
        return 512, 1024, min(100 * 2**20, int(vmem_phys * 0.78)), False
    if "v5" in kind:
        # v5e is roughly balanced at tm=256; spend VMEM on large hidden tiles.
        return 256, 512, min(100 * 2**20, int(vmem_phys * 0.78)), False
    # Unknown backend (e.g. interpret): conservative.
    return 256, 512, min(64 * 2**20, int(vmem_phys * 0.5)), False


def _vmem_need_bytes(tm, th, dim, x_isz, w_isz, o_isz):
    return (2 * tm * dim * x_isz          # x row tile, double-buffered
            + 2 * 2 * dim * th * w_isz    # w1 + w3 column blocks, double-buffered
            + 2 * th * dim * w_isz        # w2 row block, double-buffered
            + 2 * tm * dim * o_isz        # output row tile
            + tm * dim * 4                # f32 accumulator scratch
            + 3 * tm * th * 4             # h1 / h3 / gated f32 intermediates
            + 3 * dim * th * 2            # bf16 upcast weight temporaries
            + (2 << 20))                  # slack for compiler-internal scratch


def _hidden_tile_candidates(hidden, target):
    """Divisors of `hidden` that are multiples of 128, descending, <= target."""
    cands = []
    c = (min(target, hidden) // 128) * 128
    while c >= 128:
        if hidden % c == 0:
            cands.append(c)
        c -= 128
    if not cands:
        cands = [hidden]                  # hidden < 128 (or non-128-multiple): full block
    return cands


# ---------------------------------- forward ------------------------------------

@functools.partial(jax.jit, static_argnames=("tile_m", "tile_h", "compute_dtype"))
def gated_feed_forward(x, w1, w3, w2, *, tile_m=None, tile_h=None,
                       compute_dtype=jnp.bfloat16):
    """SwiGLU FFN: (silu(x @ w1) * (x @ w3)) @ w2.

    x : (..., dim)       activations (any leading dims)
    w1: (dim, hidden)    gate projection   (from prepare_ffn_weights)
    w3: (dim, hidden)    up projection
    w2: (hidden, dim)    down projection
    tile_m / tile_h: optional overrides; None -> generation-aware defaults.
    """
    orig_shape = x.shape
    dim = orig_shape[-1]
    hidden = w1.shape[1]
    out_dtype = x.dtype

    kind, vmem_phys = _tpu_generation()
    cfg_tm, cfg_th, vmem_cap, two_tc = _select_config(kind, vmem_phys)
    tm_target = cfg_tm if tile_m is None else tile_m
    th_target = cfg_th if tile_h is None else tile_h

    x2d = x.reshape(-1, dim)
    M = x2d.shape[0]

    # ---- row tile: MXU-sized, >= bf16 (16,128) min tile, >= 2 blocks on v7x ----
    row_align = 16 if jnp.dtype(compute_dtype).itemsize < 4 else 8
    tm = tm_target if M > tm_target else max(row_align, _round_up(M, row_align))
    if two_tc and M > 8 * row_align:
        # guarantee grid[0] >= 2 so the "parallel" row axis feeds both TensorCores
        tm = min(tm, max(128, _round_up((M + 1) // 2, row_align)))
    M_pad = _round_up(M, tm)

    # ---- hidden tile: largest 128-multiple divisor that fits the VMEM budget ----
    x_isz = jnp.dtype(compute_dtype).itemsize
    w_isz = max(jnp.dtype(w1.dtype).itemsize, jnp.dtype(w2.dtype).itemsize)
    o_isz = jnp.dtype(out_dtype).itemsize
    budget = vmem_cap * 4 // 5
    cands = _hidden_tile_candidates(hidden, th_target)
    th = cands[-1]
    for c in cands:
        if _vmem_need_bytes(tm, c, dim, x_isz, w_isz, o_isz) <= budget:
            th = c
            break
    need = _vmem_need_bytes(tm, th, dim, x_isz, w_isz, o_isz)
    # Never clamp the limit below the actual requirement.
    vmem_limit = min(vmem_cap, max(32 * 2**20, need * 5 // 4))
    vmem_limit = int(max(vmem_limit, min(int(vmem_phys * 0.9), need * 9 // 8)))

    if M_pad != M:
        x2d = jnp.pad(x2d, ((0, M_pad - M), (0, 0)))   # zero rows -> zero output rows
    xc = x2d.astype(compute_dtype)

    grid = (M_pad // tm, hidden // th)

    cost = pl.CostEstimate(
        flops=3 * 2 * M_pad * dim * hidden,
        transcendentals=M_pad * hidden,                 # sigmoid inside silu
        bytes_accessed=(M_pad * dim * (x_isz + o_isz)
                        + grid[0] * 3 * dim * hidden * w_isz))

    out2d = pl.pallas_call(
        _swiglu_ffn_kernel,
        out_shape=jax.ShapeDtypeStruct((M_pad, dim), out_dtype),
        grid=grid,
        in_specs=[
            pl.BlockSpec((tm, dim), lambda i, k: (i, 0)),   # x row tile
            pl.BlockSpec((dim, th), lambda i, k: (0, k)),   # w1 column block
            pl.BlockSpec((dim, th), lambda i, k: (0, k)),   # w3 column block
            pl.BlockSpec((th, dim), lambda i, k: (k, 0)),   # w2 row block
        ],
        out_specs=pl.BlockSpec((tm, dim), lambda i, k: (i, 0)),
        scratch_shapes=[pltpu.VMEM((tm, dim), jnp.float32)],
        compiler_params=pltpu.CompilerParams(
            dimension_semantics=("parallel", "arbitrary"),
            vmem_limit_bytes=vmem_limit),
        cost_estimate=cost,
    )(xc, w1, w3, w2)

    if M_pad != M:
        out2d = out2d[:M]
    return out2d.reshape(orig_shape)


# ----------------------------- weight preparation ------------------------------

def ternarize(w):
    # TernarySTE.forward: threshold = mean(|w|) * 0.7 ; (|w| > thr) * sign(w)
    thr = jnp.mean(jnp.abs(w)) * 0.7
    return (jnp.abs(w) > thr).astype(w.dtype) * jnp.sign(w)


def prepare_ffn_weights(w1_pt, w2_pt, w3_pt, *, use_ternary,
                        compute_dtype=jnp.bfloat16):
    """One-time weight preparation (call OUTSIDE the per-step forward path).

    Inputs use the nn.Linear (out_features, in_features) layout:
      w1_pt: (hidden, dim)   w2_pt: (dim, hidden)   w3_pt: (hidden, dim)
    Returns (w1, w3, w2) with shapes (dim, H), (dim, H), (H, dim), where H is
    hidden padded to a multiple of 128 (zero padding -> exact).  Ternary weights
    are stored as int8 ({-1,0,1} exact, half the HBM weight traffic); non-ternary
    weights as compute_dtype.  The kernel upcasts to bf16 in VMEM before matmul.
    """
    w1_pt = jnp.asarray(w1_pt)
    w2_pt = jnp.asarray(w2_pt)
    w3_pt = jnp.asarray(w3_pt)
    if use_ternary:
        w1_pt, w2_pt, w3_pt = ternarize(w1_pt), ternarize(w2_pt), ternarize(w3_pt)
        store_dtype = jnp.int8
    else:
        store_dtype = compute_dtype

    w1 = w1_pt.T.astype(store_dtype)      # (dim, hidden)
    w3 = w3_pt.T.astype(store_dtype)      # (dim, hidden)
    w2 = w2_pt.T.astype(store_dtype)      # (hidden, dim)

    hidden = w1.shape[1]
    hidden_p = max(128, _round_up(hidden, 128))
    if hidden_p != hidden:
        pad = hidden_p - hidden
        w1 = jnp.pad(w1, ((0, 0), (0, pad)))
        w3 = jnp.pad(w3, ((0, 0), (0, pad)))
        w2 = jnp.pad(w2, ((0, pad), (0, 0)))
    return w1, w3, w2


def kaiming_uniform_torch(key, out_features, in_features, dtype=jnp.float32):
    # nn.init.kaiming_uniform_(w, a=sqrt(5)) on an (out, in) matrix:
    # bound = sqrt(6 / ((1 + a^2) * fan_in)) = 1 / sqrt(fan_in)
    bound = 1.0 / (in_features ** 0.5)
    return jax.random.uniform(key, (out_features, in_features),
                              minval=-bound, maxval=bound, dtype=dtype)


# ------------------------------------ test -------------------------------------

if __name__ == "__main__":
    # Small shapes consistent with the module.  M = 2*100 = 200 rows so the
    # forced-tile run exercises row tiling, hidden-axis accumulation AND the
    # M-padding path (grid = (2, 2) with tile_m = tile_h = 128).
    batch, seq, dim, hidden = 2, 100, 128, 256
    use_ternary = True

    key = jax.random.PRNGKey(0)
    kx, k1, k2, k3 = jax.random.split(key, 4)

    x = jax.random.normal(kx, (batch, seq, dim), dtype=jnp.float32)

    # PyTorch stores Linear weights as (out_features, in_features).
    w1_pt = kaiming_uniform_torch(k1, hidden, dim)    # w1: dim -> hidden
    w2_pt = kaiming_uniform_torch(k2, dim, hidden)    # w2: hidden -> dim
    w3_pt = kaiming_uniform_torch(k3, hidden, dim)    # w3: dim -> hidden

    # One-time weight prep (ternarize + transpose + int8) hoisted out of the
    # forward path: no per-call weight conversion traffic remains.
    w1, w3, w2 = prepare_ffn_weights(w1_pt, w2_pt, w3_pt, use_ternary=use_ternary)

    # 1) generation-aware auto tiling
    out = gated_feed_forward(x, w1, w3, w2)
    jax.block_until_ready(out)
    assert out.shape == x.shape

    # 2) forced small tiles: exercises hidden-axis accumulation + row padding
    out_small = gated_feed_forward(x, w1, w3, w2, tile_m=128, tile_h=128)
    jax.block_until_ready(out_small)
    assert out_small.shape == x.shape

    # Pure-JAX f32 reference of the PyTorch forward.
    if use_ternary:
        w1_r, w2_r, w3_r = ternarize(w1_pt), ternarize(w2_pt), ternarize(w3_pt)
    else:
        w1_r, w2_r, w3_r = w1_pt, w2_pt, w3_pt
    x2d = x.reshape(-1, dim)
    h1 = x2d @ w1_r.T
    h3 = x2d @ w3_r.T
    ref = ((h1 * jax.nn.sigmoid(h1)) * h3) @ w2_r.T
    ref = ref.reshape(batch, seq, dim)

    # bf16 activations in the kernel -> scaled tolerance; ternary weights are
    # exactly representable in both int8 storage and bf16 compute.
    scale = float(jnp.max(jnp.abs(ref))) + 1e-6
    for o in (out, out_small):
        rel_err = float(jnp.max(jnp.abs(o - ref))) / scale
        assert rel_err < 2e-2, f"mismatch vs reference: normalized max err = {rel_err}"

    print("KERNEL_OK")
</pallas_src>

<mosaic_0001>
module attributes {stable_mosaic.version = 11 : i64} {
  func.func @_swiglu_ffn_kernel(%arg0: i32, %arg1: i32, %arg2: memref<208x128xbf16, #tpu.memory_space<vmem>>, %arg3: memref<128x256xi8, #tpu.memory_space<vmem>>, %arg4: memref<128x256xi8, #tpu.memory_space<vmem>>, %arg5: memref<256x128xi8, #tpu.memory_space<vmem>>, %arg6: memref<208x128xf32, #tpu.memory_space<vmem>>, %arg7: memref<208x128xf32, #tpu.memory_space<vmem>>) attributes {dimension_semantics = [#tpu.dimension_semantics<parallel>, #tpu.dimension_semantics<arbitrary>], iteration_bounds = array<i64: 1, 1>, scalar_prefetch = 0 : i64, scratch_operands = 1 : i64, tpu.core_type = #tpu.core_type<tc>, window_params = [{transform_indices = @transform_0, window_bounds = array<i64: 208, 128>}, {transform_indices = @transform_1, window_bounds = array<i64: 128, 256>}, {transform_indices = @transform_2, window_bounds = array<i64: 128, 256>}, {transform_indices = @transform_3, window_bounds = array<i64: 256, 128>}, {transform_indices = @transform_4, window_bounds = array<i64: 208, 128>}]} {
    %c0_i32 = arith.constant 0 : i32
    %0 = arith.cmpi eq, %arg1, %c0_i32 : i32
    %1 = arith.extui %0 : i1 to i32
    %c0_i32_0 = arith.constant 0 : i32
    %2 = arith.cmpi ne, %1, %c0_i32_0 : i32
    scf.if %2 {
      %cst_17 = arith.constant 0.000000e+00 : f32
      %27 = vector.broadcast %cst_17 : f32 to vector<208x128xf32>
      %c0_18 = arith.constant 0 : index
      %c0_19 = arith.constant 0 : index
      %28 = vector.load %arg7[%c0_18, %c0_19] : memref<208x128xf32, #tpu.memory_space<vmem>>, vector<208x128xf32>
      tpu.vector_store %arg7[%c0_18, %c0_19], %27 {strides = array<i32>} : memref<208x128xf32, #tpu.memory_space<vmem>>, vector<208x128xf32>,
    } else {
    }
    %c0 = arith.constant 0 : index
    %c0_1 = arith.constant 0 : index
    %3 = vector.load %arg2[%c0, %c0_1] : memref<208x128xbf16, #tpu.memory_space<vmem>>, vector<208x128xbf16>
    %c0_2 = arith.constant 0 : index
    %c0_3 = arith.constant 0 : index
    %4 = vector.load %arg3[%c0_2, %c0_3] : memref<128x256xi8, #tpu.memory_space<vmem>>, vector<128x256xi8>
    %5 = arith.sitofp %4 : vector<128x256xi8> to vector<128x256xbf16>
    %c0_4 = arith.constant 0 : index
    %c0_5 = arith.constant 0 : index
    %6 = vector.load %arg4[%c0_4, %c0_5] : memref<128x256xi8, #tpu.memory_space<vmem>>, vector<128x256xi8>
    %7 = arith.sitofp %6 : vector<128x256xi8> to vector<128x256xbf16>
    %cst = arith.constant dense<0.000000e+00> : vector<208x256xf32>
    %8 = tpu.matmul %3, %5, %cst {dimension_numbers = #tpu.dot_dimension_numbers<[1], [0], [0], [1], [0, 0, 1, 1], [], []>} : vector<208x128xbf16>, vector<128x256xbf16>, vector<208x256xf32> -> vector<208x256xf32>
    %cst_6 = arith.constant dense<0.000000e+00> : vector<208x256xf32>
    %9 = tpu.matmul %3, %7, %cst_6 {dimension_numbers = #tpu.dot_dimension_numbers<[1], [0], [0], [1], [0, 0, 1, 1], [], []>} : vector<208x128xbf16>, vector<128x256xbf16>, vector<208x256xf32> -> vector<208x256xf32>
    %10 = arith.negf %8 : vector<208x256xf32>
    %11 = math.exp %10 : vector<208x256xf32>
    %cst_7 = arith.constant 1.000000e+00 : f32
    %12 = vector.broadcast %cst_7 : f32 to vector<208x256xf32>
    %13 = arith.addf %12, %11 : vector<208x256xf32>
    %14 = arith.divf %12, %13 : vector<208x256xf32>
    %15 = arith.mulf %8, %14 : vector<208x256xf32>
    %16 = arith.mulf %15, %9 : vector<208x256xf32>
    %c0_8 = arith.constant 0 : index
    %c0_9 = arith.constant 0 : index
    %17 = vector.load %arg7[%c0_8, %c0_9] : memref<208x128xf32, #tpu.memory_space<vmem>>, vector<208x128xf32>
    %18 = arith.truncf %16 : vector<208x256xf32> to vector<208x256xbf16>
    %c0_10 = arith.constant 0 : index
    %c0_11 = arith.constant 0 : index
    %19 = vector.load %arg5[%c0_10, %c0_11] : memref<256x128xi8, #tpu.memory_space<vmem>>, vector<256x128xi8>
    %20 = arith.sitofp %19 : vector<256x128xi8> to vector<256x128xbf16>
    %cst_12 = arith.constant dense<0.000000e+00> : vector<208x128xf32>
    %21 = tpu.matmul %18, %20, %cst_12 {dimension_numbers = #tpu.dot_dimension_numbers<[1], [0], [0], [1], [0, 0, 1, 1], [], []>} : vector<208x256xbf16>, vector<256x128xbf16>, vector<208x128xf32> -> vector<208x128xf32>
    %22 = arith.addf %17, %21 : vector<208x128xf32>
    %c0_13 = arith.constant 0 : index
    %c0_14 = arith.constant 0 : index
    %23 = vector.load %arg7[%c0_13, %c0_14] : memref<208x128xf32, #tpu.memory_space<vmem>>, vector<208x128xf32>
    tpu.vector_store %arg7[%c0_13, %c0_14], %22 {strides = array<i32>} : memref<208x128xf32, #tpu.memory_space<vmem>>, vector<208x128xf32>,
    %c0_i32_15 = arith.constant 0 : i32
    %24 = arith.cmpi eq, %arg1, %c0_i32_15 : i32
    %25 = arith.extui %24 : i1 to i32
    %c0_i32_16 = arith.constant 0 : i32
    %26 = arith.cmpi ne, %25, %c0_i32_16 : i32
    scf.if %26 {
      %c0_17 = arith.constant 0 : index
      %c0_18 = arith.constant 0 : index
      %27 = vector.load %arg7[%c0_17, %c0_18] : memref<208x128xf32, #tpu.memory_space<vmem>>, vector<208x128xf32>
      %c0_19 = arith.constant 0 : index
      %c0_20 = arith.constant 0 : index
      %28 = vector.load %arg6[%c0_19, %c0_20] : memref<208x128xf32, #tpu.memory_space<vmem>>, vector<208x128xf32>
      tpu.vector_store %arg6[%c0_19, %c0_20], %27 {strides = array<i32>} : memref<208x128xf32, #tpu.memory_space<vmem>>, vector<208x128xf32>,
    } else {
    }
    return
  }
  func.func @transform_0(%arg0: i32, %arg1: i32) -> (i32, i32) {
    %c0_i32 = arith.constant 0 : i32
    %c0_i32_0 = arith.constant 0 : i32
    return %arg0, %c0_i32 : i32, i32
  }
  func.func @transform_1(%arg0: i32, %arg1: i32) -> (i32, i32) {
    %c0_i32 = arith.constant 0 : i32
    %c0_i32_0 = arith.constant 0 : i32
    return %c0_i32, %arg1 : i32, i32
  }
  func.func @transform_2(%arg0: i32, %arg1: i32) -> (i32, i32) {
    %c0_i32 = arith.constant 0 : i32
    %c0_i32_0 = arith.constant 0 : i32
    return %c0_i32, %arg1 : i32, i32
  }
  func.func @transform_3(%arg0: i32, %arg1: i32) -> (i32, i32) {
    %c0_i32 = arith.constant 0 : i32
    %c0_i32_0 = arith.constant 0 : i32
    return %arg1, %c0_i32 : i32, i32
  }
  func.func @transform_4(%arg0: i32, %arg1: i32) -> (i32, i32) {
    %c0_i32 = arith.constant 0 : i32
    %c0_i32_0 = arith.constant 0 : i32
    return %arg0, %c0_i32 : i32, i32
  }
}

</mosaic_0001>

<bundles_post_ra>
// kernel: gated_feed_forward.1
= control target key start
LH: loop header
LB: loop body
LE: loop exit
PB: predicated region body
PF: predicated region fallthrough
CT: control target
= control target key end

     0   :  { %v1663_v2 = vmov 0   ;;  %s2258_s1 = inlined_call_operand.vmem [shape: s8[128,256], index: 1, kind: input, shape index: {}]   ;;  %s2259_s0 = inlined_call_operand.vmem [shape: bf16[208,128], index: 0, kind: input, shape index: {}]   ;;  %s2260_s2 = inlined_call_operand.vmem [shape: s8[128,256], index: 2, kind: input, shape index: {}]   ;;  %s2261_s3 = inlined_call_operand.vmem [shape: s8[256,128], index: 3, kind: input, shape index: {}]   ;;  %s2262_s4 = inlined_call_operand.vmem [shape: f32[208,128], index: 4, kind: output, shape index: {}]  }
   0x1   :  { %v81_v0 = vld [vmem:[%s2258_s1 + $0x38] sm:$0xff]  ;;  %v80_v1 = vld [vmem:[%s2258_s1 + $0x30] sm:$0xff]  ;;  %232 = vmatprep.mubr.bf16.mxu0 %v1663_v2  ;;  %302 = vmatprep.mubr.bf16.mxu1 %v1663_v2  ;;  %v79_v6 = vld [vmem:[%s2258_s1 + $0x28] sm:$0xff] }
   0x2   :  { %v95_v3 = vunpack.c.l.s8.bf16 %v81_v0  ;;  %v97_v4 = vunpack.c.h.s8.bf16 %v81_v0  ;;  %v96_v5 = vunpack.c.h.s8.bf16 %v80_v1  ;;  %v94_v7 = vunpack.c.l.s8.bf16 %v80_v1  ;;  %v78_v9 = vld [vmem:[%s2258_s1 + $0x20] sm:$0xff]  ;;  %v77_v12 = vld [vmem:[%s2258_s1 + $0x18] sm:$0xff]  ;;  %v76_v15 = vld [vmem:[%s2258_s1 + $0x10] sm:$0xff] }
   0x3   :  { %v93_v8 = vunpack.c.h.s8.bf16 %v79_v6  ;;  %v92_v10 = vunpack.c.h.s8.bf16 %v78_v9  ;;  %v91_v11 = vunpack.c.l.s8.bf16 %v79_v6  ;;  %v90_v13 = vunpack.c.l.s8.bf16 %v78_v9  ;;  %v75_v18 = vld [vmem:[%s2258_s1 + $0x8] sm:$0xff]  ;;  %v74_v21 = vld [vmem:[%s2258_s1] sm:$0xff]  ;;  %v105_v24 = vld [vmem:[%s2260_s2 + $0x38] sm:$0xff] }
   0x4   :  { %200 = vmatprep.subr.bf16.mxu0 %v97_v4  ;;  %1425 = vmatprep.subr.bf16.mxu1 %v97_v4  ;;  %v89_v14 = vunpack.c.h.s8.bf16 %v77_v12  ;;  %v88_v16 = vunpack.c.h.s8.bf16 %v76_v15  ;;  %v87_v17 = vunpack.c.l.s8.bf16 %v77_v12  ;;  %v86_v19 = vunpack.c.l.s8.bf16 %v76_v15  ;;  %v104_v27 = vld [vmem:[%s2260_s2 + $0x30] sm:$0xff]  ;;  %v1724_v28 = vld [vmem:[%s2259_s0] sm:$0xff]   ;;  %v1729_v29 = vld [vmem:[%s2259_s0 + $0x38] sm:$0xff]  }
   0x5   :  { %201 = vmatpush1.bf16.msra.mxu0 %v96_v5  ;;  %1433 = vmatpush1.bf16.msra.mxu1 %v96_v5  ;;  %v85_v20 = vunpack.c.h.s8.bf16 %v75_v18  ;;  %v84_v22 = vunpack.c.h.s8.bf16 %v74_v21  ;;  %v83_v23 = vunpack.c.l.s8.bf16 %v75_v18  ;;  %v82_v25 = vunpack.c.l.s8.bf16 %v74_v21  ;;  %v103_v32 = vld [vmem:[%s2260_s2 + $0x28] sm:$0xff]  ;;  %v102_v35 = vld [vmem:[%s2260_s2 + $0x20] sm:$0xff]  ;;  %v101_v40 = vld [vmem:[%s2260_s2 + $0x18] sm:$0xff] }
   0x6   :  { %202 = vmatprep.subr.bf16.mxu0 %v95_v3  ;;  %1426 = vmatprep.subr.bf16.mxu1 %v95_v3  ;;  %v121_v26 = vunpack.c.h.s8.bf16 %v105_v24  ;;  %v120_v30 = vunpack.c.h.s8.bf16 %v104_v27  ;;  %v119_v31 = vunpack.c.l.s8.bf16 %v105_v24  ;;  %v118_v33 = vunpack.c.l.s8.bf16 %v104_v27  ;;  %v1444_v36 = vld [vmem:[%s2259_s0 + $0x8] sm:$0xff]   ;;  %v1747_v37 = vld [vmem:[%s2259_s0 + $0x40] sm:$0xff]   ;;  %v100_v43 = vld [vmem:[%s2260_s2 + $0x10] sm:$0xff] }
   0x7   :  { %v117_v34 = vunpack.c.h.s8.bf16 %v103_v32  ;;  %v116_v38 = vunpack.c.h.s8.bf16 %v102_v35  ;;  %v115_v39 = vunpack.c.l.s8.bf16 %v103_v32  ;;  %v114_v41 = vunpack.c.l.s8.bf16 %v102_v35  ;;  %v1446_v44 = vld [vmem:[%s2259_s0 + $0x10] sm:$0xff]   ;;  %v1764_v45 = vld [vmem:[%s2259_s0 + $0x48] sm:$0xff]   ;;  %v98_v51 = vld [vmem:[%s2260_s2] sm:$0xff] }
   0x8   :  { %v113_v42 = vunpack.c.h.s8.bf16 %v101_v40  ;;  %v112_v46 = vunpack.c.h.s8.bf16 %v100_v43  ;;  %v111_v47 = vunpack.c.l.s8.bf16 %v101_v40  ;;  %v99_v48 = vld [vmem:[%s2260_s2 + $0x8] sm:$0xff]  ;;  %v110_v49 = vunpack.c.l.s8.bf16 %v100_v43  ;;  %v1448_v52 = vld [vmem:[%s2259_s0 + $0x18] sm:$0xff]   ;;  %v1781_v53 = vld [vmem:[%s2259_s0 + $0x50] sm:$0xff]  }
   0x9   :  { %203 = vmatpush1.bf16.msra.mxu0 %v94_v7  ;;  %1434 = vmatpush1.bf16.msra.mxu1 %v94_v7  ;;  %v109_v50 = vunpack.c.h.s8.bf16 %v99_v48  ;;  %v108_v54 = vunpack.c.h.s8.bf16 %v98_v51  ;;  %v107_v55 = vunpack.c.l.s8.bf16 %v99_v48  ;;  %v106_v56 = vunpack.c.l.s8.bf16 %v98_v51  ;;  %v1450_v57 = vld [vmem:[%s2259_s0 + $0x20] sm:$0xff]   ;;  %v1451_v58 = vld [vmem:[%s2259_s0 + $0x58] sm:$0xff]   ;;  %v1452_v59 = vld [vmem:[%s2259_s0 + $0x28] sm:$0xff]  }
   0xa   :  { %204 = vmatprep.subr.bf16.mxu0 %v93_v8  ;;  %1427 = vmatprep.subr.bf16.mxu1 %v93_v8  ;;  %v1453_v60 = vld [vmem:[%s2259_s0 + $0x60] sm:$0xff]   ;;  %v1454_v61 = vld [vmem:[%s2259_s0 + $0x30] sm:$0xff]   ;;  %v1001_v62 = vld [vmem:[%s2261_s3 + $0x38] sm:$0xff] }
   0xb   :  { %v1017_v63 = vunpack.c.h.s8.bf16 %v1001_v62  ;;  %v997_v0 = vld [vmem:[%s2261_s3 + $0x18] sm:$0xff]  ;;  %v1016_v3 = vunpack.c.l.s8.bf16 %v1001_v62  ;;  %v1000_v5 = vld [vmem:[%s2261_s3 + $0x30] sm:$0xff]  ;;  %v994_v18 = vld [vmem:[%s2261_s3] sm:$0xff] }
   0xc   :  { %v1009_v1 = vunpack.c.h.s8.bf16 %v997_v0  ;;  %v1008_v4 = vunpack.c.l.s8.bf16 %v997_v0  ;;  %v1015_v6 = vunpack.c.h.s8.bf16 %v1000_v5  ;;  %v996_v7 = vld [vmem:[%s2261_s3 + $0x10] sm:$0xff]  ;;  %v1014_v9 = vunpack.c.l.s8.bf16 %v1000_v5 }
   0xd   :  { %205 = vmatpush1.bf16.msra.mxu0 %v92_v10  ;;  %1435 = vmatpush1.bf16.msra.mxu1 %v92_v10  ;;  %v1007_v8 = vunpack.c.h.s8.bf16 %v996_v7  ;;  %v1006_v10 = vunpack.c.l.s8.bf16 %v996_v7  ;;  %v1002_v21 = vunpack.c.l.s8.bf16 %v994_v18 }
   0xe   :  { %206 = vmatprep.subr.bf16.mxu0 %v91_v11  ;;  %1428 = vmatprep.subr.bf16.mxu1 %v91_v11  ;;  %v999_v11 = vld [vmem:[%s2261_s3 + $0x28] sm:$0xff] }
   0xf   :  { %v1013_v12 = vunpack.c.h.s8.bf16 %v999_v11  ;;  %v1012_v15 = vunpack.c.l.s8.bf16 %v999_v11 }
  0x11   :  { %207 = vmatpush1.bf16.msra.mxu0 %v90_v13  ;;  %1436 = vmatpush1.bf16.msra.mxu1 %v90_v13  ;;  %v995_v13 = vld [vmem:[%s2261_s3 + $0x8] sm:$0xff] }
  0x12   :  { %208 = vmatprep.subr.bf16.mxu0 %v89_v14  ;;  %1429 = vmatprep.subr.bf16.mxu1 %v89_v14  ;;  %v1005_v14 = vunpack.c.h.s8.bf16 %v995_v13 }
  0x15   :  { %209 = vmatpush1.bf16.msra.mxu0 %v88_v16  ;;  %1437 = vmatpush1.bf16.msra.mxu1 %v88_v16  ;;  %v1004_v16 = vunpack.c.l.s8.bf16 %v995_v13 }
  0x16   :  { %210 = vmatprep.subr.bf16.mxu0 %v87_v17  ;;  %1430 = vmatprep.subr.bf16.mxu1 %v87_v17 }
  0x19   :  { %211 = vmatpush1.bf16.msra.mxu0 %v86_v19  ;;  %1438 = vmatpush1.bf16.msra.mxu1 %v86_v19  ;;  %v1003_v19 = vunpack.c.h.s8.bf16 %v994_v18 }
  0x1a   :  { %212 = vmatprep.subr.bf16.mxu0 %v85_v20  ;;  %1431 = vmatprep.subr.bf16.mxu1 %v85_v20 }
  0x1d   :  { %213 = vmatpush1.bf16.msra.mxu0 %v84_v22  ;;  %1439 = vmatpush1.bf16.msra.mxu1 %v84_v22 }
  0x1e   :  { %214 = vmatprep.subr.bf16.mxu0 %v83_v23  ;;  %1432 = vmatprep.subr.bf16.mxu1 %v83_v23 }
  0x21   :  { %215 = vmatpush1.bf16.msra.mxu0 %v82_v25  ;;  %1440 = vmatpush1.bf16.msra.mxu1 %v82_v25 }
  0x22   :  { %363 = vmatprep.subr.bf16.mxu1 %v121_v26  ;;  %1331 = vmatprep.subr.bf16.mxu0 %v1017_v63 }
  0x24   :  { %233 = vmatmul.mubr.bf16.vlgmr.msra.gmra.mxu0 %v1724_v28  ;;  %303 = vmatmul.mubr.bf16.vlgmr.msra.gmra.mxu1 %v1729_v29 }
  0x25   :  { %364 = vmatpush1.bf16.msra.mxu1 %v120_v30  ;;  %242 = vmatprep.mubr.bf16.mxu0 %v1663_v2 }
  0x26   :  { %365 = vmatprep.subr.bf16.mxu1 %v119_v31  ;;  %312 = vmatprep.mubr.bf16.mxu1 %v1663_v2 }
  0x27   :  { %1332 = vmatpush3.bf16.msra.mxu0 %v1009_v1 }
  0x28   :  { %1333 = vmatprep.subr.bf16.mxu0 %v1016_v3 }
  0x29   :  { %366 = vmatpush1.bf16.msra.mxu1 %v118_v33 }
  0x2a   :  { %367 = vmatprep.subr.bf16.mxu1 %v117_v34 }
  0x2b   :  { %1334 = vmatpush3.bf16.msra.mxu0 %v1008_v4 }
  0x2c   :  { %243 = vmatmul.mubr.bf16.gmra.mxu0 %v1444_v36  ;;  %313 = vmatmul.mubr.bf16.gmra.mxu1 %v1747_v37 }
  0x2d   :  { %368 = vmatpush1.bf16.msra.mxu1 %v116_v38  ;;  %252 = vmatprep.mubr.bf16.mxu0 %v1663_v2 }
  0x2e   :  { %322 = vmatprep.mubr.bf16.mxu1 %v1663_v2  ;;  %369 = vmatprep.subr.bf16.mxu1 %v115_v39 }
  0x2f   :  { %1335 = vmatprep.subr.bf16.mxu0 %v1015_v6 }
  0x30   :  { %1336 = vmatpush3.bf16.msra.mxu0 %v1007_v8 }
  0x31   :  { %370 = vmatpush1.bf16.msra.mxu1 %v114_v41  ;;  %1337 = vmatprep.subr.bf16.mxu0 %v1014_v9 }
  0x32   :  { %371 = vmatprep.subr.bf16.mxu1 %v113_v42 }
  0x34   :  { %253 = vmatmul.mubr.bf16.gmra.mxu0 %v1446_v44  ;;  %323 = vmatmul.mubr.bf16.gmra.mxu1 %v1764_v45 }
  0x35   :  { %262 = vmatprep.mubr.bf16.mxu0 %v1663_v2  ;;  %332 = vmatprep.mubr.bf16.mxu1 %v1663_v2 }
  0x36   :  { %372 = vmatpush1.bf16.msra.mxu1 %v112_v46  ;;  %1338 = vmatpush3.bf16.msra.mxu0 %v1006_v10 }
  0x37   :  { %373 = vmatprep.subr.bf16.mxu1 %v111_v47  ;;  %1339 = vmatprep.subr.bf16.mxu0 %v1013_v12 }
  0x3a   :  { %374 = vmatpush1.bf16.msra.mxu1 %v110_v49  ;;  %1340 = vmatpush3.bf16.msra.mxu0 %v1005_v14 }
  0x3b   :  { %375 = vmatprep.subr.bf16.mxu1 %v109_v50  ;;  %1341 = vmatprep.subr.bf16.mxu0 %v1012_v15 }
  0x3c   :  { %263 = vmatmul.mubr.bf16.gmra.mxu0 %v1448_v52  ;;  %333 = vmatmul.mubr.bf16.gmra.mxu1 %v1781_v53 }
  0x3d   :  { %272 = vmatprep.mubr.bf16.mxu0 %v1663_v2  ;;  %342 = vmatprep.mubr.bf16.mxu1 %v1663_v2 }
  0x3e   :  { %376 = vmatpush1.bf16.msra.mxu1 %v108_v54  ;;  %1342 = vmatpush3.bf16.msra.mxu0 %v1004_v16 }
  0x3f   :  { %377 = vmatprep.subr.bf16.mxu1 %v107_v55 }
  0x42   :  { %378 = vmatpush1.bf16.msra.mxu1 %v106_v56 }
  0x44   :  { %273 = vmatmul.mubr.bf16.gmra.mxu0 %v1450_v57  ;;  %343 = vmatmul.mubr.bf16.gmra.mxu1 %v1451_v58 }
  0x45   :  { %282 = vmatprep.mubr.bf16.mxu0 %v1663_v2  ;;  %352 = vmatprep.mubr.bf16.mxu1 %v1663_v2 }
  0x4c   :  { %283 = vmatmul.mubr.bf16.gmra.mxu0 %v1452_v59  ;;  %353 = vmatmul.mubr.bf16.gmra.mxu1 %v1453_v60 }
  0x4d   :  { %292 = vmatprep.mubr.bf16.mxu0 %v1663_v2  ;;  %395 = vmatprep.mubr.bf16.mxu1 %v1663_v2 }
  0x54   :  { %293 = vmatmul.mubr.bf16.gmra.mxu0 %v1454_v61  ;;  %396 = vmatmul.mubr.bf16.vlgmr.msra.gmra.mxu1 %v1724_v28 }
  0x55   :  { %405 = vmatprep.mubr.bf16.mxu1 %v1663_v2 }
  0x5c   :  { %406 = vmatmul.mubr.bf16.gmra.mxu1 %v1444_v36 }
  0x5d   :  { %415 = vmatprep.mubr.bf16.mxu1 %v1663_v2 }
  0x64   :  { %416 = vmatmul.mubr.bf16.gmra.mxu1 %v1446_v44 }
  0x65   :  { %425 = vmatprep.mubr.bf16.mxu1 %v1663_v2 }
  0x6c   :  { %426 = vmatmul.mubr.bf16.gmra.mxu1 %v1448_v52 }
  0x6d   :  { %435 = vmatprep.mubr.bf16.mxu1 %v1663_v2 }
  0x74   :  { %436 = vmatmul.mubr.bf16.gmra.mxu1 %v1450_v57 }
  0x75   :  { %445 = vmatprep.mubr.bf16.mxu1 %v1663_v2 }
  0x7c   :  { %446 = vmatmul.mubr.bf16.gmra.mxu1 %v1452_v59 }
  0x7d   :  { %455 = vmatprep.mubr.bf16.mxu1 %v1663_v2 }
  0x84   :  { %456 = vmatmul.mubr.bf16.gmra.mxu1 %v1454_v61 }
  0x85   :  { %465 = vmatprep.mubr.bf16.mxu1 %v1663_v2 }
  0x8c   :  { %466 = vmatmul.mubr.bf16.gmra.mxu1 %v1729_v29 }
  0x8d   :  { %475 = vmatprep.mubr.bf16.mxu1 %v1663_v2 }
  0x94   :  { %476 = vmatmul.mubr.bf16.gmra.mxu1 %v1747_v37 }
  0x95   :  { %485 = vmatprep.mubr.bf16.mxu1 %v1663_v2 }
  0x9c   :  { %486 = vmatmul.mubr.bf16.gmra.mxu1 %v1764_v45 }
  0x9d   :  { %495 = vmatprep.mubr.bf16.mxu1 %v1663_v2 }
  0xa4   :  { %496 = vmatmul.mubr.bf16.gmra.mxu1 %v1781_v53 }
  0xa5   :  { %505 = vmatprep.mubr.bf16.mxu1 %v1663_v2 }
  0xac   :  { %506 = vmatmul.mubr.bf16.gmra.mxu1 %v1451_v58 }
  0xad   :  { %515 = vmatprep.mubr.bf16.mxu1 %v1663_v2  ;;  %v998_v2 = vld [vmem:[%s2261_s3 + $0x20] sm:$0xff] }
  0xae   :  { %v1011_v17 = vunpack.c.h.s8.bf16 %v998_v2  ;;  %v1010_v20 = vunpack.c.l.s8.bf16 %v998_v2 }
  0xb0   :  { %1343 = vmatprep.subr.bf16.mxu0 %v1011_v17 }
  0xb1   :  { %1344 = vmatpush3.bf16.msra.mxu0 %v1003_v19 }
  0xb2   :  { %1345 = vmatprep.subr.bf16.mxu0 %v1010_v20 }
  0xb4   :  { %516 = vmatmul.mubr.bf16.gmra.mxu1 %v1453_v60 }
  0xb5   :  { %1346 = vmatpush3.bf16.msra.mxu0 %v1002_v21 }
  0xe4   :  { %v1846_v22 = vpop.f32.mrf.mxu0  ;;  %v1848_v23 = vpop.f32.mrf.mxu1 }
  0xe5   :  { %v1279_v32 = vmul.f32 -1.442695, %v1846_v22  ;;  %v1307_v59 = vmul.f32 -1.442695, %v1848_v23 }
  0xe6   :  { %v1850_v24 = vpop.f32.mrf.mxu0  ;;  %v1852_v25 = vpop.f32.mrf.mxu1 }
  0xe7   :  { %v1280_v33 = vmul.f32 -1.442695, %v1850_v24  ;;  %1455 = vpow2.f32 %v1279_v32 }
  0xe8   :  { %v1854_v26 = vpop.f32.mrf.mxu0  ;;  %v1856_v27 = vpop.f32.mrf.mxu1 }
  0xe9   :  { %v1281_v36 = vmul.f32 -1.442695, %v1854_v26  ;;  %1457 = vpow2.f32 %v1280_v33 }
  0xea   :  { %v1858_v28 = vpop.f32.mrf.mxu0  ;;  %v1860_v29 = vpop.f32.mrf.mxu1 }
  0xeb   :  { %v1282_v39 = vmul.f32 -1.442695, %v1858_v28  ;;  %1459 = vpow2.f32 %v1281_v36 }
  0xec   :  { %v1862_v30 = vpop.f32.mrf.mxu0  ;;  %v1864_v31 = vpop.f32.mrf.mxu1 }
  0xed   :  { %1461 = vpow2.f32 %v1282_v39  ;;  %v1283_v50 = vmul.f32 -1.442695, %v1862_v30 }
  0xee   :  { %v1868_v34 = vpop.f32.mrf.mxu0  ;;  %v1870_v35 = vpop.f32.mrf.mxu1 }
  0xef   :  { %v1284_v42 = vmul.f32 -1.442695, %v1868_v34 }
  0xf0   :  { %v1873_v37 = vpop.f32.mrf.mxu0  ;;  %v1875_v38 = vpop.f32.mrf.mxu1 }
  0xf1   :  { %v1285_v45 = vmul.f32 -1.442695, %v1873_v37  ;;  %1463 = vpow2.f32 %v1284_v42 }
  0xf2   :  { %v1878_v40 = vpop.f32.mrf.mxu0  ;;  %v1880_v41 = vpop.f32.mrf.mxu1 }
  0xf3   :  { %v1286_v48 = vmul.f32 -1.442695, %v1878_v40  ;;  %1465 = vpow2.f32 %v1285_v45 }
  0xf4   :  { %v1883_v43 = vpop.f32.mrf.mxu0  ;;  %v1885_v44 = vpop.f32.mrf.mxu1 }
  0xf5   :  { %1467 = vpow2.f32 %v1286_v48  ;;  %v1456_v54 = vpop.eup %1455  ;;  %v1287_v4 = vmul.f32 -1.442695, %v1883_v43 }
  0xf6   :  { %v1888_v46 = vpop.f32.mrf.mxu0  ;;  %v1890_v47 = vpop.f32.mrf.mxu1  ;;  %1469 = vpow2.f32 %v1283_v50  ;;  %v682_v61 = vadd.f32 1.0, %v1456_v54 }
  0xf7   :  { %v1458_v57 = vpop.eup %1457  ;;  %1471 = vpow2.f32 %v1307_v59  ;;  %v1288_v7 = vmul.f32 -1.442695, %v1888_v46 }
  0xf8   :  { %v1893_v49 = vpop.f32.mrf.mxu1  ;;  %v1896_v51 = vpop.f32.mrf.mxu0  ;;  %v683_v62 = vadd.f32 1.0, %v1458_v57  ;;  %1473 = vrcp.f32 %v682_v61 }
  0xf9   :  { %v1460_v58 = vpop.eup %1459  ;;  %v1289_v12 = vmul.f32 -1.442695, %v1896_v51 }
  0xfa   :  { %v1898_v52 = vpop.f32.mrf.mxu1  ;;  %v1902_v55 = vpop.f32.mrf.mxu0  ;;  %v684_v3 = vadd.f32 1.0, %v1460_v58  ;;  %1475 = vrcp.f32 %v683_v62  ;;  %v1308_v58 = vmul.f32 -1.442695, %v1852_v25 }
  0xfb   :  { %v1462_v1 = vpop.eup %1461  ;;  %v1290_v16 = vmul.f32 -1.442695, %v1902_v55 }
  0xfc   :  { %v1900_v53 = vpop.f32.mrf.mxu1  ;;  %v1909_v63 = vpop.f32.mrf.mxu0  ;;  %v685_v8 = vadd.f32 1.0, %v1462_v1  ;;  %1477 = vrcp.f32 %v684_v3  ;;  %v1309_v1 = vmul.f32 -1.442695, %v1856_v27 }
  0xfd   :  { %1479 = vpow2.f32 %v1287_v4  ;;  %v1291_v21 = vmul.f32 -1.442695, %v1909_v63  ;;  %v1310_v4 = vmul.f32 -1.442695, %v1860_v29 }
  0xfe   :  { %v1904_v56 = vpop.f32.mrf.mxu1  ;;  %v1464_v6 = vpop.eup %1463  ;;  %1481 = vpow2.f32 %v1288_v7 }
  0xff   :  { %v1917_v9 = vpop.f32.mrf.mxu0  ;;  %v687_v14 = vadd.f32 1.0, %v1464_v6  ;;  %1483 = vrcp.f32 %v685_v8  ;;  %v1311_v8 = vmul.f32 -1.442695, %v1864_v31 }
 0x100   :  { %v1907_v60 = vpop.f32.mrf.mxu1  ;;  %v1466_v11 = vpop.eup %1465  ;;  %1485 = vpow2.f32 %v1289_v12  ;;  %v1292_v33 = vmul.f32 -1.442695, %v1917_v9 }
 0x101   :  { %v688_v2 = vadd.f32 1.0, %v1466_v11  ;;  %v1925_v17 = vpop.f32.mrf.mxu0  ;;  %1487 = vrcp.f32 %v687_v14 }
 0x102   :  { %v1911_v0 = vpop.f32.mrf.mxu1  ;;  %v1468_v13 = vpop.eup %1467  ;;  %1489 = vpow2.f32 %v1290_v16  ;;  %v1293_v45 = vmul.f32 -1.442695, %v1925_v17 }
 0x103   :  { %2272 = vst [vmem:[#allocation3_spill] sm:$0xff] %v1911_v0  ;;  %v1470_v19 = vpop.eup %1469  ;;  %v689_v20 = vadd.f32 1.0, %v1468_v13  ;;  %1491 = vrcp.f32 %v688_v2  ;;  %v1933_v39 = vpop.f32.mrf.mxu0 }
 0x104   :  { %v1914_v5 = vpop.f32.mrf.mxu1  ;;  %v686_v36 = vadd.f32 1.0, %v1470_v19  ;;  %v1940_v50 = vpop.eup %1471  ;;  %v1294_v54 = vmul.f32 -1.442695, %v1933_v39 }
 0x105   :  { %2273 = vst [vmem:[#allocation4_spill] sm:$0xff] %v1914_v5  ;;  %1493 = vrcp.f32 %v689_v20  ;;  %v1474_v57 = vpop.eup %1473  ;;  %v1944_v59 = vpop.f32.mrf.mxu0 }
 0x106   :  { %v1919_v10 = vpop.f32.mrf.mxu1  ;;  %1495 = vpow2.f32 %v1291_v21 }
 0x107   :  { %1497 = vpow2.f32 %v1292_v33  ;;  %v1476_v62 = vpop.eup %1475  ;;  %v1951_v12 = vpop.f32.mrf.mxu0 }
 0x108   :  { %v1922_v15 = vpop.f32.mrf.mxu1  ;;  %1499 = vrcp.f32 %v686_v36 }
 0x109   :  { %1501 = vpow2.f32 %v1293_v45  ;;  %v1478_v3 = vpop.eup %1477 }
 0x10a   :  { %v1927_v18 = vpop.f32.mrf.mxu1  ;;  %v1480_v7 = vpop.eup %1479  ;;  %1503 = vpow2.f32 %v1294_v54  ;;  %v840_v33 = vmul.f32 %v1478_v3, %v1854_v26  ;;  %v839_v54 = vmul.f32 %v1476_v62, %v1850_v24 }
 0x10b   :  { %v1482_v11 = vpop.eup %1481  ;;  %1505 = vpow2.f32 %v1308_v58  ;;  %v690_v19 = vadd.f32 1.0, %v1480_v7 }
 0x10c   :  { %v1930_v32 = vpop.f32.mrf.mxu1  ;;  %v1484_v14 = vpop.eup %1483  ;;  %1507 = vpow2.f32 %v1309_v1  ;;  %v691_v16 = vadd.f32 1.0, %v1482_v11 }
 0x10d   :  { %2274 = vst [vmem:[#allocation5_spill] sm:$0xff] %v1930_v32  ;;  %v1486_v2 = vpop.eup %1485  ;;  %1509 = vpow2.f32 %v1310_v4  ;;  %v841_v58 = vmul.f32 %v1484_v14, %v1858_v28  ;;  %v1312_v32 = vmul.f32 -1.442695, %v1870_v35  ;;  %v838_v4 = vmul.f32 %v1474_v57, %v1846_v22 }
 0x10e   :  { %v1935_v42 = vpop.f32.mrf.mxu1  ;;  %v1488_v21 = vpop.eup %1487  ;;  %1511 = vpow2.f32 %v1311_v8  ;;  %v692_v36 = vadd.f32 1.0, %v1486_v2  ;;  %v1313_v28 = vmul.f32 -1.442695, %v1875_v38 }
 0x10f   :  { %2275 = vst [vmem:[#allocation6_spill] sm:$0xff] %v1935_v42  ;;  %v1490_v45 = vpop.eup %1489  ;;  %1513 = vrcp.f32 %v691_v16 }
 0x110   :  { %v1938_v48 = vpop.f32.mrf.mxu1  ;;  %v1492_v11 = vpop.eup %1491  ;;  %1515 = vrcp.f32 %v692_v36  ;;  %v693_v7 = vadd.f32 1.0, %v1490_v45 }
 0x111   :  { %2276 = vst [vmem:[#allocation7_spill] sm:$0xff] %v1938_v48  ;;  %v1957_v48 = vpop.f32.mrf.mxu0  ;;  %1517 = vrcp.f32 %v690_v19  ;;  %v843_v19 = vmul.f32 %v1488_v21, %v1868_v34 }
 0x112   :  { %v1946_v61 = vpop.f32.mrf.mxu1  ;;  %v1494_v26 = vpop.eup %1493  ;;  %1519 = vrcp.f32 %v693_v7 }
 0x113   :  { %2277 = vst [vmem:[#allocation8_spill] sm:$0xff] %v1946_v61  ;;  %v1496_v24 = vpop.eup %1495  ;;  %1521 = vpow2.f32 %v1312_v32  ;;  %v1961_v16 = vpop.f32.mrf.mxu0  ;;  %v845_v32 = vmul.f32 %v1494_v26, %v1878_v40  ;;  %v1295_v40 = vmul.f32 -1.442695, %v1944_v59 }
 0x114   :  { %v397_v6 = vpop.f32.mrf.mxu1  ;;  %v1498_v14 = vpop.eup %1497  ;;  %1523 = vpow2.f32 %v1313_v28 }
 0x115   :  { %v890_v62 = vmul.f32 %v838_v4, %v397_v6  ;;  %v1500_v22 = vpop.eup %1499  ;;  %v695_v57 = vadd.f32 1.0, %v1498_v14  ;;  %v1969_v4 = vpop.f32.mrf.mxu0 }
 0x116   :  { %v399_v13 = vpop.f32.mrf.mxu1 }
 0x117   :  { %v891_v3 = vmul.f32 %v839_v54, %v399_v13  ;;  %v1314_v13 = vmul.f32 -1.442695, %v1880_v41  ;;  %v844_v54 = vmul.f32 %v1492_v11, %v1873_v37  ;;  %1525 = vrcp.f32 %v695_v57 }
 0x118   :  { %v401_v20 = vpop.f32.mrf.mxu1  ;;  %v1297_v57 = vmul.f32 -1.442695, %v1957_v48 }
 0x119   :  { %v892_v61 = vmul.f32 %v840_v33, %v401_v20  ;;  %v1502_v20 = vpop.eup %1501  ;;  %v694_v33 = vadd.f32 1.0, %v1496_v24 }
 0x11a   :  { %v403_v1 = vpop.f32.mrf.mxu1  ;;  %v696_v6 = vadd.f32 1.0, %v1502_v20 }
 0x11b   :  { %v893_v8 = vmul.f32 %v841_v58, %v403_v1  ;;  %v968_v36 = vpack.c.bf16 %v892_v61, %v890_v62  ;;  %v1504_v58 = vpop.eup %1503  ;;  %v710_v1 = vadd.f32 1.0, %v1940_v50  ;;  %v842_v61 = vmul.f32 %v1500_v22, %v1862_v30 }
 0x11c   :  { %v407_v2 = vpop.f32.mrf.mxu1  ;;  %v1506_v7 = vpop.eup %1505  ;;  %1527 = vrcp.f32 %v696_v6  ;;  %v1296_v50 = vmul.f32 -1.442695, %v1951_v12 }
 0x11d   :  { %v969_v42 = vpack.c.bf16 %v893_v8, %v891_v3  ;;  %v1508_v11 = vpop.eup %1507  ;;  %1529 = vrcp.f32 %v694_v33  ;;  %v894_v30 = vmul.f32 %v842_v61, %v407_v2  ;;  %v711_v62 = vadd.f32 1.0, %v1506_v7 }
 0x11e   :  { %v409_v5 = vpop.f32.mrf.mxu1  ;;  %v1510_v8 = vpop.eup %1509  ;;  %v1298_v2 = vmul.f32 -1.442695, %v1961_v16 }
 0x11f   :  { %1050 = vmatprep.mubr.bf16.mxu0 %v969_v42  ;;  %v895_v34 = vmul.f32 %v843_v19, %v409_v5  ;;  %v697_v42 = vadd.f32 1.0, %v1504_v58  ;;  %v1512_v28 = vpop.eup %1511  ;;  %v1973_v5 = vpop.f32.mrf.mxu0  ;;  %v712_v19 = vadd.f32 1.0, %v1508_v11 }
 0x120   :  { %v411_v45 = vpop.f32.mrf.mxu1  ;;  %1051 = vmatmul.mubr.bf16.vlgmr.msra.gmra.mxu0 %v968_v36  ;;  %v1514_v22 = vpop.eup %1513  ;;  %v714_v61 = vadd.f32 1.0, %v1512_v28 }
 0x121   :  { %v896_v3 = vmul.f32 %v844_v54, %v411_v45  ;;  %1531 = vrcp.f32 %v697_v42  ;;  %v1516_v20 = vpop.eup %1515  ;;  %v1978_v6 = vpop.f32.mrf.mxu0  ;;  %v1299_v42 = vmul.f32 -1.442695, %v1969_v4 }
 0x122   :  { %v413_v21 = vpop.f32.mrf.mxu1  ;;  %1533 = vpow2.f32 %v1314_v13  ;;  %v1518_v45 = vpop.eup %1517  ;;  %v713_v13 = vadd.f32 1.0, %v1510_v8 }
 0x123   :  { %v897_v37 = vmul.f32 %v845_v32, %v413_v21  ;;  %1535 = vrcp.f32 %v710_v1  ;;  %v970_v36 = vpack.c.bf16 %v896_v3, %v894_v30  ;;  %v1520_v54 = vpop.eup %1519  ;;  %v848_v32 = vmul.f32 %v1516_v20, %v1896_v51 }
 0x124   :  { %v417_v26 = vpop.f32.mrf.mxu1  ;;  %1537 = vpow2.f32 %v1295_v40  ;;  %v1522_v1 = vpop.eup %1521  ;;  %v849_v21 = vmul.f32 %v1520_v54, %v1902_v55  ;;  %v846_v7 = vmul.f32 %v1518_v45, %v1883_v43  ;;  %v1300_v51 = vmul.f32 -1.442695, %v1973_v5 }
 0x125   :  { %v971_v24 = vpack.c.bf16 %v897_v37, %v895_v34  ;;  %1539 = vpow2.f32 %v1296_v50  ;;  %v847_v34 = vmul.f32 %v1514_v22, %v1888_v46  ;;  %v1985_v8 = vpop.eup %1523  ;;  %v715_v50 = vadd.f32 1.0, %v1522_v1  ;;  %v1987_v46 = vpop.f32.mrf.mxu0 }
 0x126   :  { %v419_v14 = vpop.f32.mrf.mxu1  ;;  %1541 = vrcp.f32 %v711_v62  ;;  %v898_v55 = vmul.f32 %v846_v7, %v417_v26  ;;  %v1301_v43 = vmul.f32 -1.442695, %v1978_v6  ;;  %v1315_v22 = vmul.f32 -1.442695, %v1885_v44 }
 0x127   :  { %1058 = vmatprep.mubr.bf16.mxu0 %v971_v24  ;;  %1543 = vpow2.f32 %v1297_v57  ;;  %v899_v11 = vmul.f32 %v847_v34, %v419_v14  ;;  %v1526_v24 = vpop.eup %1525  ;;  %v1302_v20 = vmul.f32 -1.442695, %v1987_v46  ;;  %v1316_v26 = vmul.f32 -1.442695, %v1890_v47 }
 0x128   :  { %v421_v33 = vpop.f32.mrf.mxu1  ;;  %1059 = vmatmul.mubr.bf16.gmra.mxu0 %v970_v36  ;;  %1545 = vrcp.f32 %v712_v19  ;;  %v1317_v54 = vmul.f32 -1.442695, %v1893_v49  ;;  %v1318_v1 = vmul.f32 -1.442695, %v1898_v52  ;;  %v1319_v7 = vmul.f32 -1.442695, %v1900_v53 }
 0x129   :  { %v900_v3 = vmul.f32 %v848_v32, %v421_v33  ;;  %1547 = vpow2.f32 %v1298_v2  ;;  %v1528_v62 = vpop.eup %1527 }
 0x12a   :  { %v423_v58 = vpop.f32.mrf.mxu1  ;;  %1549 = vrcp.f32 %v713_v13  ;;  %v1530_v36 = vpop.eup %1529  ;;  %v852_v33 = vmul.f32 %v1528_v62, %v1925_v17  ;;  %v851_v13 = vmul.f32 %v1526_v24, %v1917_v9 }
 0x12b   :  { %v901_v40 = vmul.f32 %v849_v21, %v423_v58  ;;  %1551 = vrcp.f32 %v714_v61  ;;  %v972_v57 = vpack.c.bf16 %v900_v3, %v898_v55  ;;  %v850_v61 = vmul.f32 %v1530_v36, %v1909_v63 }
 0x12c   :  { %v427_v37 = vpop.f32.mrf.mxu1  ;;  %1553 = vpow2.f32 %v1299_v42  ;;  %v716_v36 = vadd.f32 1.0, %v1985_v8 }
 0x12d   :  { %v973_v28 = vpack.c.bf16 %v901_v40, %v899_v11  ;;  %1555 = vpow2.f32 %v1300_v51 }
 0x12e   :  { %v429_v30 = vpop.f32.mrf.mxu1  ;;  %v1532_v19 = vpop.eup %1531  ;;  %1557 = vrcp.f32 %v715_v50 }
 0x12f   :  { %1066 = vmatprep.mubr.bf16.mxu0 %v973_v28  ;;  %v1994_v2 = vpop.eup %1533  ;;  %v853_v32 = vmul.f32 %v1532_v19, %v1933_v39  ;;  %1559 = vpow2.f32 %v1301_v43  ;;  %v903_v42 = vmul.f32 %v851_v13, %v429_v30  ;;  %v902_v39 = vmul.f32 %v850_v61, %v427_v37  ;;  %v2010_v50 = vpop.f32.mrf.mxu0 }
 0x130   :  { %v431_v14 = vpop.f32.mrf.mxu1  ;;  %1067 = vmatmul.mubr.bf16.gmra.mxu0 %v972_v57  ;;  %v1999_v58 = vpop.eup %1535  ;;  %1561 = vpow2.f32 %v1315_v22  ;;  %2278 = vst [vmem:[#allocation9_spill] sm:$0xff] %v2010_v50  ;;  %v1320_v22 = vmul.f32 -1.442695, %v1904_v56  ;;  %v1322_v13 = vmul.f32 -1.442695, %v1911_v0 }
 0x131   :  { %v904_v34 = vmul.f32 %v852_v33, %v431_v14  ;;  %v1538_v21 = vpop.eup %1537  ;;  %1563 = vpow2.f32 %v1302_v20  ;;  %v2022_v19 = vpop.f32.mrf.mxu0  ;;  %v1321_v33 = vmul.f32 -1.442695, %v1907_v60 }
 0x132   :  { %v433_v45 = vpop.f32.mrf.mxu1  ;;  %v1540_v9 = vpop.eup %1539  ;;  %1565 = vpow2.f32 %v1316_v26  ;;  %v698_v24 = vadd.f32 1.0, %v1538_v21  ;;  %2279 = vst [vmem:[#allocation10_spill] sm:$0xff] %v2022_v19 }
 0x133   :  { %v905_v3 = vmul.f32 %v853_v32, %v433_v45  ;;  %v2008_v11 = vpop.eup %1541  ;;  %1567 = vpow2.f32 %v1317_v54  ;;  %v699_v40 = vadd.f32 1.0, %v1540_v9  ;;  %v974_v43 = vpack.c.bf16 %v904_v34, %v902_v39  ;;  %v2034_v34 = vpop.f32.mrf.mxu0 }
 0x134   :  { %v2003_v17 = vpop.f32.mrf.mxu1  ;;  %v1544_v55 = vpop.eup %1543  ;;  %1569 = vpow2.f32 %v1318_v1 }
 0x135   :  { %v975_v63 = vpack.c.bf16 %v905_v3, %v903_v42  ;;  %v2014_v30 = vpop.eup %1545  ;;  %1571 = vpow2.f32 %v1319_v7  ;;  %v700_v62 = vadd.f32 1.0, %v1544_v55 }
 0x136   :  { %v2006_v51 = vpop.f32.mrf.mxu1  ;;  %v1548_v37 = vpop.eup %1547  ;;  %1573 = vrcp.f32 %v699_v40  ;;  %v717_v40 = vadd.f32 1.0, %v1994_v2  ;;  %v1305_v2 = vmul.f32 -1.442695, %v2034_v34 }
 0x137   :  { %1074 = vmatprep.mubr.bf16.mxu0 %v975_v63  ;;  %v2019_v14 = vpop.eup %1549  ;;  %1575 = vrcp.f32 %v700_v62  ;;  %v701_v20 = vadd.f32 1.0, %v1548_v37  ;;  %v2042_v62 = vpop.f32.mrf.mxu0 }
 0x138   :  { %v2012_v28 = vpop.f32.mrf.mxu1  ;;  %1075 = vmatmul.mubr.bf16.gmra.mxu0 %v974_v43  ;;  %v2024_v26 = vpop.eup %1551  ;;  %1577 = vrcp.f32 %v698_v24  ;;  %v1303_v43 = vmul.f32 -1.442695, %v2010_v50  ;;  %2280 = vst [vmem:[#allocation11_spill] sm:$0xff] %v2042_v62 }
 0x139   :  { %v1554_v54 = vpop.eup %1553  ;;  %1579 = vrcp.f32 %v701_v20 }
 0x13a   :  { %v2017_v57 = vpop.f32.mrf.mxu1  ;;  %v1556_v32 = vpop.eup %1555  ;;  %1581 = vpow2.f32 %v1320_v22  ;;  %v702_v7 = vadd.f32 1.0, %v1554_v54  ;;  %v1304_v22 = vmul.f32 -1.442695, %v2022_v19  ;;  %v1306_v54 = vmul.f32 -1.442695, %v2042_v62 }
 0x13b   :  { %v2032_v8 = vpop.eup %1557  ;;  %1583 = vrcp.f32 %v716_v36  ;;  %v703_v61 = vadd.f32 1.0, %v1556_v32 }
 0x13c   :  { %v2027_v45 = vpop.f32.mrf.mxu1  ;;  %v1560_v21 = vpop.eup %1559  ;;  %1585 = vpow2.f32 %v1321_v33 }
 0x13d   :  { %v1562_v3 = vpop.eup %1561  ;;  %1587 = vpow2.f32 %v1322_v13  ;;  %v704_v9 = vadd.f32 1.0, %v1560_v21 }
 0x13e   :  { %v2030_v1 = vpop.f32.mrf.mxu1  ;;  %v1564_v39 = vpop.eup %1563  ;;  %1589 = vrcp.f32 %v703_v61 }
 0x13f   :  { %v1566_v55 = vpop.eup %1565  ;;  %1591 = vrcp.f32 %v704_v9  ;;  %v705_v24 = vadd.f32 1.0, %v1564_v39  ;;  %v718_v9 = vadd.f32 1.0, %v1562_v3 }
 0x140   :  { %v2036_v42 = vpop.f32.mrf.mxu1  ;;  %v1568_v37 = vpop.eup %1567  ;;  %1593 = vrcp.f32 %v702_v7 }
 0x141   :  { %v1570_v20 = vpop.eup %1569  ;;  %1595 = vrcp.f32 %v705_v24  ;;  %v720_v62 = vadd.f32 1.0, %v1568_v37 }
 0x142   :  { %v2039_v63 = vpop.f32.mrf.mxu1  ;;  %v1572_v33 = vpop.eup %1571  ;;  %1597 = vrcp.f32 %v717_v40 }
 0x143   :  { %v1574_v32 = vpop.eup %1573  ;;  %1599 = vpow2.f32 %v1303_v43 }
 0x144   :  { %v2045_v36 = vpop.f32.mrf.mxu1  ;;  %v1576_v61 = vpop.eup %1575  ;;  %1601 = vpow2.f32 %v1304_v22  ;;  %v721_v22 = vadd.f32 1.0, %v1570_v20 }
 0x145   :  { %2281 = vst [vmem:[#allocation12_spill] sm:$0xff] %v2045_v36  ;;  %v1578_v7 = vpop.eup %1577  ;;  %1603 = vpow2.f32 %v1305_v2  ;;  %v719_v36 = vadd.f32 1.0, %v1566_v55  ;;  %v856_v24 = vmul.f32 %v1576_v61, %v1957_v48  ;;  %v722_v55 = vadd.f32 1.0, %v1572_v33 }
 0x146   :  { %v2049_v13 = vpop.f32.mrf.mxu1  ;;  %v1580_v39 = vpop.eup %1579  ;;  %1605 = vpow2.f32 %v1306_v54 }
 0x147   :  { %2282 = vst [vmem:[#allocation13_spill] sm:$0xff] %v2049_v13  ;;  %v1582_v40 = vpop.eup %1581  ;;  %v855_v13 = vmul.f32 %v1574_v32, %v1951_v12  ;;  %v857_v43 = vmul.f32 %v1580_v39, %v1961_v16  ;;  %v908_v3 = vmul.f32 %v856_v24, %v2012_v28  ;;  %1607 = vrcp.f32 %v718_v9 }
 0x148   :  { %v2051_v21 = vpop.f32.mrf.mxu1  ;;  %v1584_v19 = vpop.eup %1583  ;;  %1609 = vrcp.f32 %v719_v36  ;;  %v723_v37 = vadd.f32 1.0, %v1582_v40  ;;  %v868_v28 = vmul.f32 %v2014_v30, %v1856_v27 }
 0x149   :  { %2283 = vst [vmem:[#allocation14_spill] sm:$0xff] %v2051_v21  ;;  %v854_v21 = vmul.f32 %v1578_v7, %v1944_v59  ;;  %v1586_v0 = vpop.eup %1585  ;;  %v907_v48 = vmul.f32 %v855_v13, %v2006_v51  ;;  %v909_v54 = vmul.f32 %v857_v43, %v2017_v57  ;;  %v866_v59 = vmul.f32 %v1999_v58, %v1848_v23 }
 0x14a   :  { %v2054_v50 = vpop.f32.mrf.mxu1  ;;  %v1588_v61 = vpop.eup %1587  ;;  %1611 = vrcp.f32 %v720_v62  ;;  %v867_v51 = vmul.f32 %v2008_v11, %v1852_v25  ;;  %v724_v57 = vadd.f32 1.0, %v1586_v0 }
 0x14b   :  { %v906_v12 = vmul.f32 %v854_v21, %v2003_v17  ;;  %v1590_v32 = vpop.eup %1589  ;;  %v977_v20 = vpack.c.bf16 %v909_v54, %v907_v48  ;;  %1613 = vrcp.f32 %v721_v22  ;;  %v869_v17 = vmul.f32 %v2019_v14, %v1860_v29 }
 0x14c   :  { %v467_v2 = vpop.f32.mrf.mxu1  ;;  %v1592_v33 = vpop.eup %1591  ;;  %1615 = vrcp.f32 %v722_v55  ;;  %v725_v30 = vadd.f32 1.0, %v1588_v61  ;;  %v859_v62 = vmul.f32 %v1590_v32, %v1973_v5  ;;  %v870_v55 = vmul.f32 %v2024_v26, %v1864_v31 }
 0x14d   :  { %v976_v36 = vpack.c.bf16 %v908_v3, %v906_v12  ;;  %v1594_v7 = vpop.eup %1593  ;;  %1082 = vmatprep.mubr.bf16.mxu0 %v977_v20  ;;  %v2071_v23 = vmul.f32 %v866_v59, %v467_v2  ;;  %1617 = vrcp.f32 %v723_v37  ;;  %v860_v25 = vmul.f32 %v1592_v33, %v1978_v6 }
 0x14e   :  { %v469_v16 = vpop.f32.mrf.mxu1  ;;  %v1596_v27 = vpop.eup %1595  ;;  %1619 = vrcp.f32 %v724_v57  ;;  %v858_v24 = vmul.f32 %v1594_v7, %v1969_v4  ;;  %v911_v22 = vmul.f32 %v859_v62, %v2030_v1  ;;  %v872_v61 = vmul.f32 %v1584_v19, %v1875_v38 }
 0x14f   :  { %1083 = vmatmul.mubr.bf16.gmra.mxu0 %v976_v36  ;;  %v1598_v11 = vpop.eup %1597  ;;  %v861_v21 = vmul.f32 %v1596_v27, %v1987_v46  ;;  %v2078_v9 = vmul.f32 %v867_v51, %v469_v16  ;;  %v912_v5 = vmul.f32 %v860_v25, %v2036_v42  ;;  %1621 = vrcp.f32 %v725_v30 }
 0x150   :  { %v471_v13 = vpop.f32.mrf.mxu1  ;;  %v1600_v39 = vpop.eup %1599  ;;  %v910_v4 = vmul.f32 %v858_v24, %v2027_v45  ;;  %v873_v31 = vmul.f32 %v1598_v11, %v1880_v41  ;;  %v1326_v36 = vmul.f32 -1.442695, %v1927_v18  ;;  %v1324_v30 = vmul.f32 -1.442695, %v1919_v10 }
 0x151   :  { %v2073_v58 = vmul.f32 %v868_v28, %v471_v13  ;;  %v1602_v6 = vpop.eup %1601  ;;  %v706_v43 = vadd.f32 1.0, %v1600_v39  ;;  %v913_v46 = vmul.f32 %v861_v21, %v2039_v63  ;;  %v871_v63 = vmul.f32 %v2032_v8, %v1870_v35 }
 0x152   :  { %v473_v0 = vpop.f32.mrf.mxu1  ;;  %v1604_v2 = vpop.eup %1603  ;;  %v707_v48 = vadd.f32 1.0, %v1602_v6  ;;  %v978_v16 = vpack.c.bf16 %v912_v5, %v910_v4 }
 0x153   :  { %v982_v29 = vpack.c.bf16 %v2073_v58, %v2071_v23  ;;  %v2082_v14 = vmul.f32 %v869_v17, %v473_v0  ;;  %v1606_v42 = vpop.eup %1605  ;;  %1623 = vrcp.f32 %v706_v43  ;;  %v708_v37 = vadd.f32 1.0, %v1604_v2  ;;  %v2284_v2 = vld [vmem:[#allocation4_spill] sm:$0xff] }
 0x154   :  { %v477_v40 = vpop.f32.mrf.mxu1  ;;  %v979_v1 = vpack.c.bf16 %v913_v46, %v911_v22  ;;  %1625 = vrcp.f32 %v707_v48  ;;  %v709_v12 = vadd.f32 1.0, %v1606_v42  ;;  %v1608_v59 = vpop.eup %1607  ;;  %v2285_v48 = vld [vmem:[#allocation6_spill] sm:$0xff] }
 0x155   :  { %v983_v3 = vpack.c.bf16 %v2082_v14, %v2078_v9  ;;  %1627 = vrcp.f32 %v708_v37  ;;  %v2097_v26 = vmul.f32 %v870_v55, %v477_v40  ;;  %v1610_v19 = vpop.eup %1609  ;;  %v874_v17 = vmul.f32 %v1608_v59, %v1885_v44  ;;  %v2288_v59 = vld [vmem:[#allocation10_spill] sm:$0xff] }
 0x156   :  { %v479_v54 = vpop.f32.mrf.mxu1  ;;  %1090 = vmatprep.mubr.bf16.mxu0 %v979_v1  ;;  %1629 = vrcp.f32 %v709_v12  ;;  %v875_v0 = vmul.f32 %v1610_v19, %v1890_v47  ;;  %v1325_v40 = vmul.f32 -1.442695, %v1922_v15  ;;  %v1323_v55 = vmul.f32 -1.442695, %v2284_v2  ;;  %v2289_v19 = vld [vmem:[#allocation11_spill] sm:$0xff] }
 0x157   :  { %1091 = vmatmul.mubr.bf16.gmra.mxu0 %v978_v16  ;;  %v2101_v28 = vmul.f32 %v871_v63, %v479_v54  ;;  %v1612_v20 = vpop.eup %1611  ;;  %1631 = vpow2.f32 %v1326_v36  ;;  %v1328_v4 = vmul.f32 -1.442695, %v2285_v48  ;;  %v2286_v54 = vld [vmem:[#allocation8_spill] sm:$0xff] }
 0x158   :  { %v481_v32 = vpop.f32.mrf.mxu1  ;;  %v1614_v33 = vpop.eup %1613  ;;  %v876_v27 = vmul.f32 %v1612_v20, %v1893_v49  ;;  %1633 = vpow2.f32 %v1324_v30  ;;  %v1330_v42 = vmul.f32 -1.442695, %v2286_v54 }
 0x159   :  { %v2099_v45 = vmul.f32 %v872_v61, %v481_v32  ;;  %v1616_v57 = vpop.eup %1615  ;;  %v877_v11 = vmul.f32 %v1614_v33, %v1898_v52  ;;  %1635 = vpow2.f32 %v1325_v40  ;;  %v2287_v32 = vld [vmem:[#allocation3_spill] sm:$0xff]  ;;  %v2290_v33 = vld [vmem:[#allocation9_spill] sm:$0xff] }
 0x15a   :  { %v483_v38 = vpop.f32.mrf.mxu1  ;;  %v1618_v7 = vpop.eup %1617  ;;  %v878_v1 = vmul.f32 %v1616_v57, %v1900_v53  ;;  %1637 = vpow2.f32 %v1330_v42 }
 0x15b   :  { %v984_v35 = vpack.c.bf16 %v2099_v45, %v2097_v26  ;;  %v2105_v8 = vmul.f32 %v873_v31, %v483_v38  ;;  %v1620_v25 = vpop.eup %1619  ;;  %v879_v16 = vmul.f32 %v1618_v7, %v1904_v56  ;;  %v2293_v7 = vld [vmem:[#allocation12_spill] sm:$0xff]  ;;  %1639 = vpow2.f32 %v1328_v4 }
 0x15c   :  { %v487_v41 = vpop.f32.mrf.mxu1  ;;  %v1622_v5 = vpop.eup %1621  ;;  %v880_v63 = vmul.f32 %v1620_v25, %v1907_v60  ;;  %v2292_v60 = vld [vmem:[#allocation13_spill] sm:$0xff]  ;;  %1641 = vpow2.f32 %v1323_v55 }
 0x15d   :  { %v985_v51 = vpack.c.bf16 %v2105_v8, %v2101_v28  ;;  %v2115_v21 = vmul.f32 %v874_v17, %v487_v41  ;;  %v881_v31 = vmul.f32 %v1622_v5, %v2287_v32 }
 0x15e   :  { %v489_v13 = vpop.f32.mrf.mxu1 }
 0x15f   :  { %v2120_v44 = vmul.f32 %v875_v0, %v489_v13  ;;  %v2291_v13 = vld [vmem:[#allocation14_spill] sm:$0xff] }
 0x160   :  { %v491_v62 = vpop.f32.mrf.mxu1  ;;  %v1624_v43 = vpop.eup %1623 }
 0x161   :  { %v2117_v39 = vmul.f32 %v876_v27, %v491_v62  ;;  %v1626_v52 = vpop.eup %1625  ;;  %v862_v36 = vmul.f32 %v1624_v43, %v2290_v33  ;;  %v2294_v43 = vld [vmem:[#allocation7_spill] sm:$0xff] }
 0x162   :  { %v493_v24 = vpop.f32.mrf.mxu1  ;;  %v1628_v46 = vpop.eup %1627  ;;  %v863_v38 = vmul.f32 %v1626_v52, %v2288_v59  ;;  %v2295_v52 = vld [vmem:[#allocation5_spill] sm:$0xff] }
 0x163   :  { %v986_v49 = vpack.c.bf16 %v2117_v39, %v2115_v21  ;;  %v2124_v6 = vmul.f32 %v877_v11, %v493_v24  ;;  %v1630_v37 = vpop.eup %1629  ;;  %v864_v12 = vmul.f32 %v1628_v46, %v2034_v34  ;;  %v914_v30 = vmul.f32 %v862_v36, %v2293_v7 }
 0x164   :  { %v497_v47 = vpop.f32.mrf.mxu1  ;;  %v865_v20 = vmul.f32 %v1630_v37, %v2289_v19  ;;  %v915_v34 = vmul.f32 %v863_v38, %v2292_v60  ;;  %v1632_v40 = vpop.eup %1631  ;;  %v1327_v46 = vmul.f32 -1.442695, %v2295_v52 }
 0x165   :  { %v987_v22 = vpack.c.bf16 %v2124_v6, %v2120_v44  ;;  %v916_v17 = vmul.f32 %v864_v12, %v2291_v13  ;;  %v2140_v27 = vmul.f32 %v878_v1, %v497_v47  ;;  %v1329_v47 = vmul.f32 -1.442695, %v2294_v43 }
 0x166   :  { %v499_v61 = vpop.f32.mrf.mxu1  ;;  %v917_v56 = vmul.f32 %v865_v20, %v2054_v50  ;;  %v1634_v50 = vpop.eup %1633 }
 0x167   :  { %v931_v62 = vmul.f32 %v879_v16, %v499_v61  ;;  %v980_v24 = vpack.c.bf16 %v916_v17, %v914_v30  ;;  %v729_v61 = vadd.f32 1.0, %v1632_v40  ;;  %1643 = vpow2.f32 %v1329_v47  ;;  %v1636_v4 = vpop.eup %1635 }
 0x168   :  { %v501_v41 = vpop.f32.mrf.mxu1  ;;  %v981_v11 = vpack.c.bf16 %v917_v56, %v915_v34  ;;  %v727_v37 = vadd.f32 1.0, %v1634_v50  ;;  %1645 = vpow2.f32 %v1327_v46  ;;  %v1638_v1 = vpop.eup %1637  ;;  %v728_v12 = vadd.f32 1.0, %v1636_v4 }
 0x169   :  { %v2142_v53 = vmul.f32 %v880_v63, %v501_v41  ;;  %1647 = vrcp.f32 %v729_v61  ;;  %v1640_v9 = vpop.eup %1639  ;;  %v733_v63 = vadd.f32 1.0, %v1638_v1 }
 0x16a   :  { %v503_v57 = vpop.f32.mrf.mxu1  ;;  %1098 = vmatprep.mubr.bf16.mxu0 %v981_v11  ;;  %1649 = vrcp.f32 %v727_v37  ;;  %v731_v16 = vadd.f32 1.0, %v1640_v9 }
 0x16b   :  { %v988_v25 = vpack.c.bf16 %v2142_v53, %v2140_v27  ;;  %v933_v0 = vmul.f32 %v881_v31, %v503_v57  ;;  %1099 = vmatmul.mubr.bf16.gmra.mxu0 %v980_v24  ;;  %1651 = vrcp.f32 %v733_v63 }
 0x16c   :  { %1106 = vmatprep.mubr.bf16.mxu0 %v983_v3  ;;  %v507_v42 = vpop.f32.mrf.mxu1  ;;  %v1642_v3 = vpop.eup %1641  ;;  %1653 = vrcp.f32 %v728_v12 }
 0x16d   :  { %v989_v5 = vpack.c.bf16 %v933_v0, %v931_v62  ;;  %v726_v32 = vadd.f32 1.0, %v1642_v3  ;;  %1655 = vrcp.f32 %v731_v16 }
 0x16e   :  { %v509_v55 = vpop.f32.mrf.mxu1 }
 0x16f   :  { %1657 = vrcp.f32 %v726_v32 }
 0x170   :  { %v511_v14 = vpop.f32.mrf.mxu1 }
 0x172   :  { %v513_v31 = vpop.f32.mrf.mxu1 }
 0x173   :  { %1107 = vmatmul.mubr.bf16.gmra.mxu0 %v982_v29 }
 0x174   :  { %1114 = vmatprep.mubr.bf16.mxu0 %v985_v51  ;;  %v1644_v23 = vpop.eup %1643  ;;  %v517_v58 = vpop.f32.mrf.mxu1 }
 0x175   :  { %v1646_v29 = vpop.eup %1645  ;;  %v732_v8 = vadd.f32 1.0, %v1644_v23 }
 0x176   :  { %v1648_v28 = vpop.eup %1647  ;;  %v730_v59 = vadd.f32 1.0, %v1646_v29  ;;  %v519_v38 = vpop.f32.mrf.mxu1 }
 0x177   :  { %v1650_v51 = vpop.eup %1649  ;;  %v885_v19 = vmul.f32 %v1648_v28, %v1927_v18  ;;  %1659 = vrcp.f32 %v732_v8 }
 0x178   :  { %v883_v26 = vmul.f32 %v1650_v51, %v1919_v10  ;;  %1661 = vrcp.f32 %v730_v59  ;;  %v1652_v6 = vpop.eup %1651 }
 0x179   :  { %v937_v45 = vmul.f32 %v885_v19, %v513_v31  ;;  %v889_v18 = vmul.f32 %v1652_v6, %v2286_v54 }
 0x17a   :  { %v935_v44 = vmul.f32 %v883_v26, %v509_v55 }
 0x17b   :  { %1115 = vmatmul.mubr.bf16.gmra.mxu0 %v984_v35  ;;  %v521_v35 = vpop.f32.mrf.mxu1 }
 0x17c   :  { %1122 = vmatprep.mubr.bf16.mxu0 %v987_v22  ;;  %v1654_v22 = vpop.eup %1653  ;;  %v991_v20 = vpack.c.bf16 %v937_v45, %v935_v44 }
 0x17d   :  { %v1656_v41 = vpop.eup %1655  ;;  %v523_v33 = vpop.f32.mrf.mxu1  ;;  %v884_v13 = vmul.f32 %v1654_v22, %v1922_v15 }
 0x17e   :  { %v1658_v36 = vpop.eup %1657  ;;  %v887_v10 = vmul.f32 %v1656_v41, %v2285_v48  ;;  %v941_v21 = vmul.f32 %v889_v18, %v523_v33 }
 0x17f   :  { %v882_v39 = vmul.f32 %v1658_v36, %v2284_v2 }
 0x180   :  { %v939_v17 = vmul.f32 %v887_v10, %v519_v38 }
 0x181   :  { %v934_v60 = vmul.f32 %v882_v39, %v507_v42 }
 0x182   :  { %v993_v56 = vpack.c.bf16 %v941_v21, %v939_v17 }
 0x183   :  { %1123 = vmatmul.mubr.bf16.gmra.mxu0 %v986_v49  ;;  %v936_v49 = vmul.f32 %v884_v13, %v511_v14 }
 0x184   :  { %1130 = vmatprep.mubr.bf16.mxu0 %v989_v5  ;;  %v1660_v34 = vpop.eup %1659 }
 0x185   :  { %v990_v57 = vpack.c.bf16 %v936_v49, %v934_v60  ;;  %v1662_v7 = vpop.eup %1661  ;;  %v888_v54 = vmul.f32 %v1660_v34, %v2294_v43 }
 0x186   :  { %v886_v15 = vmul.f32 %v1662_v7, %v2295_v52 }
 0x187   :  { %v940_v27 = vmul.f32 %v888_v54, %v521_v35 }
 0x188   :  { %v938_v53 = vmul.f32 %v886_v15, %v517_v58 }
 0x18a   :  { %v992_v48 = vpack.c.bf16 %v940_v27, %v938_v53 }
 0x18b   :  { %1131 = vmatmul.mubr.bf16.gmra.mxu0 %v988_v25 }
 0x18c   :  { %1138 = vmatprep.mubr.bf16.mxu0 %v991_v20 }
 0x193   :  { %1139 = vmatmul.mubr.bf16.gmra.mxu0 %v990_v57 }
 0x194   :  { %1146 = vmatprep.mubr.bf16.mxu0 %v993_v56 }
 0x19b   :  { %1147 = vmatmul.mubr.bf16.gmra.mxu0 %v992_v48 }
 0x1e0   :  { %v1347_v30 = vpop.f32.mrf.mxu0 }
 0x1e2   :  { %v1348_v62 = vpop.f32.mrf.mxu0 }
 0x1e3   :  { %v1349_v2 = vadd.f32 %v1348_v62, %v1347_v30 }
 0x1e4   :  { %v1350_v25 = vpop.f32.mrf.mxu0 }
 0x1e5   :  { %1236 = vst [vmem:[%s2262_s4] sm:$0xff] %v1349_v2 }
 0x1e6   :  { %v1351_v0 = vpop.f32.mrf.mxu0 }
 0x1e7   :  { %v1352_v11 = vadd.f32 %v1351_v0, %v1350_v25 }
 0x1e8   :  { %v1353_v24 = vpop.f32.mrf.mxu0 }
 0x1e9   :  { %1237 = vst [vmem:[%s2262_s4 + $0x8] sm:$0xff] %v1352_v11 }
 0x1ea   :  { %v1354_v5 = vpop.f32.mrf.mxu0 }
 0x1eb   :  { %v1355_v40 = vadd.f32 %v1354_v5, %v1353_v24 }
 0x1ec   :  { %v1356_v43 = vpop.f32.mrf.mxu0 }
 0x1ed   :  { %1238 = vst [vmem:[%s2262_s4 + $0x10] sm:$0xff] %v1355_v40 }
 0x1ee   :  { %v1357_v47 = vpop.f32.mrf.mxu0 }
 0x1ef   :  { %v1358_v50 = vadd.f32 %v1357_v47, %v1356_v43 }
 0x1f0   :  { %v1359_v52 = vpop.f32.mrf.mxu0 }
 0x1f1   :  { %1239 = vst [vmem:[%s2262_s4 + $0x18] sm:$0xff] %v1358_v50 }
 0x1f2   :  { %v1360_v46 = vpop.f32.mrf.mxu0 }
 0x1f3   :  { %v1361_v42 = vadd.f32 %v1360_v46, %v1359_v52 }
 0x1f4   :  { %v1362_v61 = vpop.f32.mrf.mxu0 }
 0x1f5   :  { %1240 = vst [vmem:[%s2262_s4 + $0x20] sm:$0xff] %v1361_v42 }
 0x1f6   :  { %v1363_v4 = vpop.f32.mrf.mxu0 }
 0x1f7   :  { %v1364_v37 = vadd.f32 %v1363_v4, %v1362_v61 }
 0x1f8   :  { %v1365_v55 = vpop.f32.mrf.mxu0 }
 0x1f9   :  { %1241 = vst [vmem:[%s2262_s4 + $0x28] sm:$0xff] %v1364_v37 }
 0x1fa   :  { %v1366_v1 = vpop.f32.mrf.mxu0 }
 0x1fb   :  { %v1367_v9 = vadd.f32 %v1366_v1, %v1365_v55 }
 0x1fc   :  { %v1368_v14 = vpop.f32.mrf.mxu0 }
 0x1fd   :  { %1242 = vst [vmem:[%s2262_s4 + $0x30] sm:$0xff] %v1367_v9 }
 0x1fe   :  { %v1369_v3 = vpop.f32.mrf.mxu0 }
 0x1ff   :  { %v1370_v63 = vadd.f32 %v1369_v3, %v1368_v14 }
 0x201   :  { %1243 = vst [vmem:[%s2262_s4 + $0x38] sm:$0xff] %v1370_v63 }
 0x20f   :  { %v1371_v12 = vpop.f32.mrf.mxu0 }
 0x211   :  { %v1372_v16 = vpop.f32.mrf.mxu0 }
 0x212   :  { %v1373_v32 = vadd.f32 %v1372_v16, %v1371_v12 }
 0x213   :  { %v1374_v31 = vpop.f32.mrf.mxu0 }
 0x214   :  { %1244 = vst [vmem:[%s2262_s4 + $0x40] sm:$0xff] %v1373_v32 }
 0x215   :  { %v1375_v23 = vpop.f32.mrf.mxu0 }
 0x216   :  { %v1376_v58 = vadd.f32 %v1375_v23, %v1374_v31 }
 0x217   :  { %v1377_v29 = vpop.f32.mrf.mxu0 }
 0x218   :  { %1245 = vst [vmem:[%s2262_s4 + $0x48] sm:$0xff] %v1376_v58 }
 0x219   :  { %v1378_v28 = vpop.f32.mrf.mxu0 }
 0x21a   :  { %v1379_v8 = vadd.f32 %v1378_v28, %v1377_v29 }
 0x21b   :  { %v1380_v51 = vpop.f32.mrf.mxu0 }
 0x21c   :  { %1246 = vst [vmem:[%s2262_s4 + $0x50] sm:$0xff] %v1379_v8 }
 0x21d   :  { %v1381_v59 = vpop.f32.mrf.mxu0 }
 0x21e   :  { %v1382_v38 = vadd.f32 %v1381_v59, %v1380_v51 }
 0x220   :  { %1247 = vst [vmem:[%s2262_s4 + $0x58] sm:$0xff] %v1382_v38 }
 0x22b   :  { %v1383_v19 = vpop.f32.mrf.mxu0 }
 0x22d   :  { %v1384_v26 = vpop.f32.mrf.mxu0 }
 0x22e   :  { %v1385_v45 = vadd.f32 %v1384_v26, %v1383_v19 }
 0x22f   :  { %v1386_v35 = vpop.f32.mrf.mxu0 }
 0x230   :  { %1248 = vst [vmem:[%s2262_s4 + $0x60] sm:$0xff] %v1385_v45 }
 0x231   :  { %v1387_v44 = vpop.f32.mrf.mxu0 }
 0x232   :  { %v1388_v6 = vadd.f32 %v1387_v44, %v1386_v35 }
 0x233   :  { %v1389_v22 = vpop.f32.mrf.mxu0 }
 0x234   :  { %1249 = vst [vmem:[%s2262_s4 + $0x68] sm:$0xff] %v1388_v6 }
 0x235   :  { %v1390_v20 = vpop.f32.mrf.mxu0 }
 0x236   :  { %v1391_v41 = vadd.f32 %v1390_v20, %v1389_v22 }
 0x237   :  { %v1392_v33 = vpop.f32.mrf.mxu0 }
 0x238   :  { %1250 = vst [vmem:[%s2262_s4 + $0x70] sm:$0xff] %v1391_v41 }
 0x239   :  { %v1393_v36 = vpop.f32.mrf.mxu0 }
 0x23a   :  { %v1394_v18 = vadd.f32 %v1393_v36, %v1392_v33 }
 0x23b   :  { %v1395_v13 = vpop.f32.mrf.mxu0 }
 0x23c   :  { %1251 = vst [vmem:[%s2262_s4 + $0x78] sm:$0xff] %v1394_v18 }
 0x23d   :  { %v1396_v10 = vpop.f32.mrf.mxu0 }
 0x23e   :  { %v1397_v21 = vadd.f32 %v1396_v10, %v1395_v13 }
 0x23f   :  { %v1398_v39 = vpop.f32.mrf.mxu0 }
 0x240   :  { %1252 = vst [vmem:[%s2262_s4 + $0x80] sm:$0xff] %v1397_v21 }
 0x241   :  { %v1399_v49 = vpop.f32.mrf.mxu0 }
 0x242   :  { %v1400_v17 = vadd.f32 %v1399_v49, %v1398_v39 }
 0x243   :  { %v1401_v60 = vpop.f32.mrf.mxu0 }
 0x244   :  { %1253 = vst [vmem:[%s2262_s4 + $0x88] sm:$0xff] %v1400_v17 }
 0x245   :  { %v1402_v34 = vpop.f32.mrf.mxu0 }
 0x246   :  { %v1403_v56 = vadd.f32 %v1402_v34, %v1401_v60 }
 0x247   :  { %v1404_v57 = vpop.f32.mrf.mxu0 }
 0x248   :  { %1254 = vst [vmem:[%s2262_s4 + $0x90] sm:$0xff] %v1403_v56 }
 0x249   :  { %v1405_v7 = vpop.f32.mrf.mxu0 }
 0x24a   :  { %v1406_v54 = vadd.f32 %v1405_v7, %v1404_v57 }
 0x24b   :  { %v1407_v15 = vpop.f32.mrf.mxu0 }
 0x24c   :  { %1255 = vst [vmem:[%s2262_s4 + $0x98] sm:$0xff] %v1406_v54 }
 0x24d   :  { %v1408_v27 = vpop.f32.mrf.mxu0 }
 0x24e   :  { %v1409_v53 = vadd.f32 %v1408_v27, %v1407_v15 }
 0x24f   :  { %v1410_v48 = vpop.f32.mrf.mxu0 }
 0x250   :  { %1256 = vst [vmem:[%s2262_s4 + $0xa0] sm:$0xff] %v1409_v53 }
 0x251   :  { %v1411_v30 = vpop.f32.mrf.mxu0 }
 0x252   :  { %v1412_v62 = vadd.f32 %v1411_v30, %v1410_v48 }
 0x253   :  { %v1413_v2 = vpop.f32.mrf.mxu0 }
 0x254   :  { %1257 = vst [vmem:[%s2262_s4 + $0xa8] sm:$0xff] %v1412_v62 }
 0x255   :  { %v1414_v25 = vpop.f32.mrf.mxu0 }
 0x256   :  { %v1415_v0 = vadd.f32 %v1414_v25, %v1413_v2 }
 0x257   :  { %v1416_v11 = vpop.f32.mrf.mxu0 }
 0x258   :  { %1258 = vst [vmem:[%s2262_s4 + $0xb0] sm:$0xff] %v1415_v0 }
 0x259   :  { %v1417_v24 = vpop.f32.mrf.mxu0 }
 0x25a   :  { %v1418_v5 = vadd.f32 %v1417_v24, %v1416_v11 }
 0x25b   :  { %v1419_v40 = vpop.f32.mrf.mxu0 }
 0x25c   :  { %1259 = vst [vmem:[%s2262_s4 + $0xb8] sm:$0xff] %v1418_v5 }
 0x25d   :  { %v1420_v43 = vpop.f32.mrf.mxu0 }
 0x25e   :  { %v1421_v47 = vadd.f32 %v1420_v43, %v1419_v40 }
 0x25f   :  { %v1422_v50 = vpop.f32.mrf.mxu0 }
 0x260   :  { %1260 = vst [vmem:[%s2262_s4 + $0xc0] sm:$0xff] %v1421_v47 }
 0x261   :  { %v1423_v52 = vpop.f32.mrf.mxu0 }
 0x262   :  { %v1424_v46 = vadd.f32 %v1423_v52, %v1422_v50 }
 0x264   :  { %1261 = vst [vmem:[%s2262_s4 + $0xc8] sm:$0xff] %v1424_v46 }

</bundles_post_ra>
